<compile_context>
chip_gen: v6e
topology: v6e:2x2x1
jax: 0.10.0
libtpu: 0.0.40
codegen_flags: <defaults>
</compile_context>

<pallas_src>
import functools
import math

import jax
import jax.numpy as jnp
from jax.experimental import pallas as pl
from jax.experimental.pallas import tpu as pltpu


def _cross_encode_mask_kernel(x_ref, o_ref, *, tq, tk, dim_q, dim_kv, span, group):
    blk = x_ref.shape                      # (bt, tq, tk)
    pred_shape = (1,) + tuple(blk[1:])     # batch-invariant predicate
    row = jax.lax.broadcasted_iota(jnp.int32, pred_shape, 1)
    lane = jax.lax.broadcasted_iota(jnp.int32, pred_shape, 2)

    if group is None:
        q_idx = pl.program_id(1) * tq + row
        kv_idx = pl.program_id(2) * tk + lane
    else:
        # Lane-densified layout for small power-of-two dim_kv:
        # x was reshaped to (batch, dim_q//group, group*dim_kv); lane l of
        # row r maps to q = r*group + (l >> log2(dim_kv)), kv = l & (dim_kv-1).
        shift = dim_kv.bit_length() - 1
        q_idx = (pl.program_id(1) * tq + row) * group + (lane >> shift)
        kv_idx = lane & (dim_kv - 1)

    lhs = kv_idx * dim_q          # kv * dim_q
    rhs = q_idx * dim_kv          # q  * dim_kv
    is_zero = lhs <= rhs
    if span is not None:
        # kv > floor(q*dim_kv/dim_q) - span  <=>  (kv + span)*dim_q > q*dim_kv
        # (all operands non-negative; span*dim_q is a compile-time constant)
        is_zero = jnp.logical_and(is_zero, (lhs + span * dim_q) > rhs)

    x = x_ref[...]
    zero = jnp.asarray(0.0, dtype=x.dtype)
    neg_inf = jnp.asarray(-jnp.inf, dtype=x.dtype)
    mask = jnp.where(is_zero, zero, neg_inf)   # (1, tq, tk), built once per block
    o_ref[...] = x + mask                      # broadcasts over folded batch dim


def _block_budget_bytes():
    """Per-generation block budget so in+out double-buffered (4 buffers) fits
    the scoped-VMEM default: v6e/v7x -> 4 MiB blocks (16 MiB <= 32 MiB scoped);
    v5e / unknown -> 2 MiB blocks (8 MiB <= 16 MiB scoped)."""
    try:
        kind = jax.devices()[0].device_kind.lower()
    except Exception:
        kind = ""
    if "v6" in kind or "v7" in kind:
        return 4 * 1024 * 1024
    return 2 * 1024 * 1024


def cross_encode_mask(x, *, span=None, donate_x=False, target_block_bytes=None):
    """x: (..., dim_q, dim_kv) float array. Returns x + mask (mask built in-kernel).

    Note: in-place aliasing via donate_x only takes effect if the caller
    actually donates x at the jit boundary; otherwise XLA inserts a copy.
    """
    orig_shape = x.shape
    assert x.ndim >= 2, "expected (..., dim_q, dim_kv)"
    *lead, dim_q, dim_kv = x.shape
    batch = math.prod(lead) if lead else 1

    # int32 index-math overflow guard (covers the span term as well).
    limit = dim_q * dim_kv + (span * dim_q if span is not None else 0)
    assert limit < 2**31, "dim_q*dim_kv (+ span*dim_q) too large for int32 index math"

    budget = target_block_bytes or _block_budget_bytes()
    itemsize = jnp.dtype(x.dtype).itemsize
    sublane = {4: 8, 2: 16, 1: 32}.get(itemsize, 8)

    # Lane-densify tiny planes: fold `group` q-values per lane-row so the last
    # dim becomes exactly 128 (kills vst.msk partial stores).
    group = None
    if 0 < dim_kv < 128 and (dim_kv & (dim_kv - 1)) == 0:
        g = 128 // dim_kv
        if dim_q % g == 0:
            group = g

    if group is not None:
        x3 = x.reshape(batch, dim_q // group, group * dim_kv)
    else:
        x3 = x.reshape(batch, dim_q, dim_kv)
    rows, lanes = x3.shape[1], x3.shape[2]

    # Tiles: keep the last dim full (lane-dense stores, contiguous HBM DMA)
    # unless even an 8-row slab of it exceeds the budget.
    row_bytes = lanes * itemsize
    if sublane * row_bytes <= budget or lanes <= 128:
        tk = lanes
        tq = min(rows, max(1, budget // max(row_bytes, 1)))
        if tq < rows:
            tq = max(sublane, (tq // sublane) * sublane)
    else:
        tq = min(rows, sublane)
        tk = min(lanes, max(128, (budget // (tq * itemsize) // 128) * 128))

    # Fold batch into a block while the plane tile is small, so each grid step
    # still moves ~budget bytes (amortizes ~0.35us per-step overhead).
    plane_bytes = max(tq * tk * itemsize, 1)
    bt = max(1, min(batch, budget // plane_bytes))

    # v7x megacore: guarantee >= 2 steps on a "parallel" axis when possible so
    # both TensorCores get work (no-op on single-TC v5e/v6e).
    if pl.cdiv(rows, tq) * pl.cdiv(lanes, tk) == 1:
        if batch >= 2:
            bt = min(bt, -(-batch // 2))
        elif rows > sublane:
            half = -(-rows // 2)
            tq = min(tq, -(-half // sublane) * sublane)

    grid = (pl.cdiv(batch, bt), pl.cdiv(rows, tq), pl.cdiv(lanes, tk))

    kernel = functools.partial(
        _cross_encode_mask_kernel,
        tq=tq, tk=tk, dim_q=dim_q, dim_kv=dim_kv, span=span, group=group,
    )

    out = pl.pallas_call(
        kernel,
        out_shape=jax.ShapeDtypeStruct(x3.shape, x3.dtype),
        grid=grid,
        in_specs=[pl.BlockSpec((bt, tq, tk), lambda b, i, j: (b, i, j))],
        out_specs=pl.BlockSpec((bt, tq, tk), lambda b, i, j: (b, i, j)),
        input_output_aliases={0: 0} if donate_x else {},
        compiler_params=pltpu.CompilerParams(
            dimension_semantics=("parallel", "parallel", "parallel"),
        ),
        cost_estimate=pl.CostEstimate(
            flops=x.size, transcendentals=0,
            bytes_accessed=2 * x.size * itemsize,
        ),
    )(x3)
    return out.reshape(orig_shape)


def _reference_mask(dim_kv, dim_q, span=None):
    """Pure-JAX replica of the PyTorch __init__ mask construction."""
    row = jnp.arange(dim_kv)[:, None]            # kv index
    col = jnp.arange(dim_q)[None, :]             # q index
    is_zero = row * dim_q <= col * dim_kv
    if span is not None:
        is_span = row > (col * dim_kv // dim_q) - span
        is_zero = jnp.logical_and(is_zero, is_span)
    mask = jnp.where(is_zero, 0.0, -jnp.inf).astype(jnp.float32)
    return mask.T                                 # (dim_q, dim_kv)


if __name__ == "__main__":
    batch, dim_q, dim_kv = 2, 8, 16
    key = jax.random.PRNGKey(0)
    x = jax.random.normal(key, (batch, dim_q, dim_kv), dtype=jnp.float32)

    # --- span=None case (exercises the lane-densified small-dim_kv path) ---
    out = jax.block_until_ready(cross_encode_mask(x, span=None))
    ref = x + _reference_mask(dim_kv, dim_q, span=None)[None]
    assert out.shape == x.shape and out.dtype == x.dtype
    assert bool(jnp.all((out == ref) | (jnp.isinf(out) & jnp.isinf(ref))))

    # --- span case ---
    out_s = jax.block_until_ready(cross_encode_mask(x, span=2))
    ref_s = x + _reference_mask(dim_kv, dim_q, span=2)[None]
    assert bool(jnp.all((out_s == ref_s) | (jnp.isinf(out_s) & jnp.isinf(ref_s))))

    # --- larger, non-square shape: regular full-lane path + tiling/folding ---
    xb = jax.random.normal(jax.random.PRNGKey(1), (3, 640, 1280), jnp.float32)
    ob = jax.block_until_ready(cross_encode_mask(xb, span=4))
    rb = xb + _reference_mask(1280, 640, span=4)[None]
    assert bool(jnp.all((ob == rb) | (jnp.isinf(ob) & jnp.isinf(rb))))

    print("KERNEL_OK")
</pallas_src>

<mosaic_0001>
module attributes {stable_mosaic.version = 11 : i64} {
  func.func @_cross_encode_mask_kernel(%arg0: i32, %arg1: i32, %arg2: i32, %arg3: memref<1x1x128xf32, #tpu.memory_space<vmem>>, %arg4: memref<1x1x128xf32, #tpu.memory_space<vmem>>) attributes {dimension_semantics = [#tpu.dimension_semantics<parallel>, #tpu.dimension_semantics<parallel>, #tpu.dimension_semantics<parallel>], iteration_bounds = array<i64: 2, 1, 1>, scalar_prefetch = 0 : i64, scratch_operands = 0 : i64, tpu.core_type = #tpu.core_type<tc>, window_params = [{transform_indices = @transform_0, window_bounds = array<i64: 1, 1, 128>}, {transform_indices = @transform_1, window_bounds = array<i64: 1, 1, 128>}]} {
    %0 = tpu.iota {dimensions = array<i32: 1>} : vector<1x1x128xi32>
    %1 = tpu.iota {dimensions = array<i32: 2>} : vector<1x1x128xi32>
    %c1_i32 = arith.constant 1 : i32
    %2 = arith.muli %arg1, %c1_i32 : i32
    %3 = vector.broadcast %2 : i32 to vector<1x1x128xi32>
    %4 = arith.addi %3, %0 : vector<1x1x128xi32>
    %c8_i32 = arith.constant 8 : i32
    %5 = vector.broadcast %c8_i32 : i32 to vector<1x1x128xi32>
    %6 = arith.muli %4, %5 : vector<1x1x128xi32>
    %c4_i32 = arith.constant 4 : i32
    %7 = vector.broadcast %c4_i32 : i32 to vector<1x1x128xi32>
    %8 = arith.shrsi %1, %7 : vector<1x1x128xi32>
    %9 = arith.addi %6, %8 : vector<1x1x128xi32>
    %c15_i32 = arith.constant 15 : i32
    %10 = vector.broadcast %c15_i32 : i32 to vector<1x1x128xi32>
    %11 = arith.andi %1, %10 : vector<1x1x128xi32>
    %c8_i32_0 = arith.constant 8 : i32
    %12 = vector.broadcast %c8_i32_0 : i32 to vector<1x1x128xi32>
    %13 = arith.muli %11, %12 : vector<1x1x128xi32>
    %c16_i32 = arith.constant 16 : i32
    %14 = vector.broadcast %c16_i32 : i32 to vector<1x1x128xi32>
    %15 = arith.muli %9, %14 : vector<1x1x128xi32>
    %16 = arith.cmpi sle, %13, %15 : vector<1x1x128xi32>
    %c0 = arith.constant 0 : index
    %c0_1 = arith.constant 0 : index
    %c0_2 = arith.constant 0 : index
    %17 = vector.load %arg3[%c0, %c0_1, %c0_2] : memref<1x1x128xf32, #tpu.memory_space<vmem>>, vector<1x1x128xf32>
    %cst = arith.constant 0.000000e+00 : f32
    %cst_3 = arith.constant 0xFF800000 : f32
    %18 = vector.broadcast %cst : f32 to vector<1x1x128xf32>
    %19 = vector.broadcast %cst_3 : f32 to vector<1x1x128xf32>
    %20 = arith.select %16, %18, %19 : vector<1x1x128xi1>, vector<1x1x128xf32>
    %21 = arith.addf %17, %20 : vector<1x1x128xf32>
    %c0_4 = arith.constant 0 : index
    %c0_5 = arith.constant 0 : index
    %c0_6 = arith.constant 0 : index
    %22 = vector.load %arg4[%c0_4, %c0_5, %c0_6] : memref<1x1x128xf32, #tpu.memory_space<vmem>>, vector<1x1x128xf32>
    tpu.vector_store %arg4[%c0_4, %c0_5, %c0_6], %21 {strides = array<i32>} : memref<1x1x128xf32, #tpu.memory_space<vmem>>, vector<1x1x128xf32>,
    return
  }
  func.func @transform_0(%arg0: i32, %arg1: i32, %arg2: i32) -> (i32, i32, i32) {
    %c0_i32 = arith.constant 0 : i32
    return %arg0, %arg1, %arg2 : i32, i32, i32
  }
  func.func @transform_1(%arg0: i32, %arg1: i32, %arg2: i32) -> (i32, i32, i32) {
    %c0_i32 = arith.constant 0 : i32
    return %arg0, %arg1, %arg2 : i32, i32, i32
  }
}

</mosaic_0001>

<bundles_post_ra>
// kernel: tpu_custom_call.1
= control target key start
LH: loop header
LB: loop body
LE: loop exit
PB: predicated region body
PF: predicated region fallthrough
CT: control target
= control target key end

     0   :  { %6 = vsyncpa [#allocation3], 0  ;;  %s597_s0 = inlined_call_operand.hbm [shape: f32[2,1,128], index: 0, kind: input, shape index: {}]   ;;  %s598_s1 = inlined_call_operand.hbm [shape: f32[2,1,128], index: 1, kind: output, shape index: {}]  }
   0x1   :  { %8 = vsyncpa [#allocation3 + $0x1], 0 }
   0x2   :  { %9 = vsyncpa [#allocation4], 0 }
   0x3   :  { %11 = vsyncpa [#allocation4 + $0x1], 0  ;;  %s462_s6 = smov 0   ;;  %s464_s7 = smov 0  }
   0x4   :  { %s466_s8 = smov 0   ;;  %s468_s9 = smov 0  }
   0x5   :  { %s470_s10 = smov 0   ;;  %s472_s11 = smov 0  }
   0x6 LB: > { %s267_s12 = sadd.s32 4294967295, %s447_s11   ;;  %s268_s13 = sadd.s32 4294967294, %s447_s11   ;;  %s447_s11 = sphi %s472_s11, %s17_s11   ;;  %s443_s10 = sphi %s470_s10, %s610_s10   ;;  %s439_s9 = sphi %s468_s9, %s609_s9   ;;  %s435_s8 = sphi %s466_s8, %s608_s8   ;;  %s431_s7 = sphi %s464_s7, %s607_s7   ;;  %s427_s6 = sphi %s462_s6, %s606_s6  }
   0x7   : > { %s36_s14 = sadd.s32 1, %s443_s10  ;;  %s47_s15 = sadd.s32 1, %s435_s8 }
   0x8   : > { %p38_p0 = scmp.ge.s32.totalorder %s36_s14, 2  ;;  %p54_p1 = scmp.ne.s32.totalorder %s435_s8, %s431_s7 }
   0x9   : > { %p55_p2 = scmp.eq.s32.totalorder %s447_s11, 0  ;;  %p60_p3 = scmp.ne.s32.totalorder %s431_s7, %s427_s6 }
   0xa   : > { %s612_s14 = smov (%p38_p0, %s36_s14), 0  ;;  %p61_p5 = scmp.eq.s32.totalorder %s267_s12, 0 }
   0xb   : > { %p503_p4 = por %p55_p2, %p54_p1  ;;  %s40_s17 = ssub.s32 %s443_s10, %s612_s14 }
   0xc   : > { %p88_p6 = scmp.eq.s32.totalorder %s267_s12, 1  ;;  %p45_p7 = scmp.eq.s32.totalorder %s40_s17, 0 }
   0xd   : > { %p509_p8 = por %p61_p5, %p60_p3  ;;  %p94_p10 = scmp.eq.s32.totalorder %s268_s13, 1 }
   0xe   : > { %p513_p9 = por %p88_p6, %p54_p1  ;;  %p288_p13 = scmp.lt.s32.totalorder %s447_s11, 2 }
   0xf   : > { %s518_s20 = scalar_select %p45_p7, %s435_s8, %s47_s15  }
  0x10   : > { %p520_p11 = por %p94_p10, %p60_p3  ;;  %s114_s22 = sand.u32 1, %s435_s8  }
  0x11   : > { %s271_s23 = sshll.u32 %s443_s10, 4  ;;  %s117_s24 = scalar_lea.vmem [#allocation2], %s114_s22 }
  0x12   : > { %s602_s21 = scalar_select %p520_p11, 1, 0 }
  0x13   : > { %s126_s25 = sshll.u32 %s117_s24, 4  ;;  %s124_s28 = scalar_lea.hbm %s597_s0, %s271_s23  ;;  %s127_s25 = int_to_ptr.vmem [resolvable:$true] %s126_s25 }
  0x14   : > { %p533_p0 = pnand %p288_p13, %p503_p4  ;;  %p272_p1 = scmp.ge.s32.totalorder %s447_s11, 1 }
  0x15   : > { %p131_p2 = scmp.lt.s32.totalorder %s447_s11, 3  ;;  %s115_s30 = scalar_lea.sflag [#allocation3], %s114_s22 }
  0x16   : > { %p341_p3 = pneg %p533_p0  ;;  %s352_s2 = scalar_lea.vmem %s127_s25, 16 }
  0x17   : > { %p353_p5 = scmp.ne.s32.totalorder %s127_s25, %s352_s2  ;;  %s449_s3 = smov [#allocation2]  }
  0x18   : > { %s357_s4 = sshll.u32 %s449_s3, 4  ;;  %s358_s4 = int_to_ptr.vmem [resolvable:$false] %s357_s4 }
  0x19   : > { %p355_p6 = pnand %p353_p5, %p341_p3  ;;  %s359_s5 = scalar_lea.vmem %s358_s4, 32 }
  0x1a   : > { %p360_p10 = scmp.lt.s32.totalorder %s127_s25, %s358_s4  ;;  %p361_p12 = scmp.lt.s32.totalorder %s359_s5, %s352_s2 }
  0x1b   : > { %p356_p7 = pneg %p355_p6 }
  0x1c   : > { %p362_p4 = por %p361_p12, %p360_p10 }
  0x1e   : > { %p363_p13 = pnand %p362_p4, %p356_p7 }
  0x20   : > { %366 = shalt.err (!%p363_p13)
}
  0x21   : > { %283 = dma.hbm_to_vmem [thread:$0]  (!%p533_p0), %s124_s28, 16, %s127_s25, %s115_s30  }
  0x22   : > { %p132_p11 = pnand %p272_p1, %p131_p2 }
  0x23   : > { %s548_s12 = sand.u32 (!%p132_p11), 1, %s431_s7  }
  0x24   : > { %135 = sbr.rel (%p132_p11) target bundleno = 69 (0x45), region = 24  ;;  %s138_s13 = scalar_lea.sflag (!%p132_p11), [#allocation3], %s548_s12 }
  0x25   : > { %s140_s15 = scalar_lea.vmem (!%p132_p11), [#allocation2], %s548_s12 }
  0x29   : > { %418 = dma.done.wait (%p509_p8), %s138_s13, 16  }
  0x2a   : > { %420 = vsyncadd (%p509_p8), %s138_s13, 4294967280  ;;  %v157_v0 = vlaneseq  ;;  %v170_v9 = vld [vmem:[%s140_s15] sm:$0x1]  ;;  %s156_s16 = scalar_lea.vmem [#allocation5], %s548_s12  ;;  %s273_s22 = sshll.u32 %s439_s9, 4  ;;  %v450_v10 = vmov -inf  }
  0x2b   : > { %s189_s17 = sshll.u32 %s156_s16, 4  ;;  %s187_s24 = scalar_lea.hbm %s598_s1, %s273_s22  ;;  %s190_s17 = int_to_ptr.vmem [resolvable:$true] %s189_s17 }
  0x2c   : > { %v158_v1 = vshrl.u32 %v157_v0, 7  ;;  %v160_v2 = vand.u32 127, %v157_v0  ;;  %s175_s25 = scalar_lea.sflag [#allocation4], %s548_s12  ;;  %s367_s26 = scalar_lea.vmem %s190_s17, 16 }
  0x2d   : > { %p368_p8 = scmp.ne.s32.totalorder %s190_s17, %s367_s26  ;;  %s451_s27 = smov [#allocation5]  }
  0x2e   : > { %v163_v3 = vmul.u32 8, %v158_v1  ;;  %v164_v4 = vshra.s32 %v160_v2, 4  ;;  %v166_v5 = vand.u32 15, %v160_v2  ;;  %s371_s28 = sshll.u32 %s451_s27, 4  ;;  %s372_s28 = int_to_ptr.vmem [resolvable:$false] %s371_s28 }
  0x2f   : > { %p369_p11 = pnand %p368_p8, %p513_p9  ;;  %s373_s9 = scalar_lea.vmem %s372_s28, 32 }
  0x30   : > { %v165_v6 = vadd.s32 %v164_v4, %v163_v3  ;;  %v167_v7 = vmul.u32 8, %v166_v5  ;;  %p374_p0 = scmp.lt.s32.totalorder %s190_s17, %s372_s28  ;;  %p375_p1 = scmp.lt.s32.totalorder %s373_s9, %s367_s26 }
  0x31   : > { %p370_p12 = pneg %p369_p11 }
  0x32   : > { %v168_v8 = vmul.u32 16, %v165_v6  ;;  %p376_p2 = por %p375_p1, %p374_p0 }
  0x34   : > { %vm169_vm0 = vcmp.le.s32.totalorder %v167_v7, %v168_v8  ;;  %p377_p3 = pnand %p376_p2, %p370_p12 }
  0x35   : > { %v171_v11 = vsel %vm169_vm0, 0.0, %v450_v10 }
  0x36   : > { %v172_v12 = vadd.f32 %v171_v11, %v170_v9 }
  0x38   : > { %173 = vst [vmem:[%s156_s16] sm:$0x1] %v172_v12 }
  0x39   : > { %380 = shalt.err (!%p377_p3)
}
  0x3a   : > { %s381_s29 = scalar_lea.hbm %s187_s24, 16  ;;  %s385_s3 = scalar_lea.hbm %s598_s1, 32 }
  0x3b   : > { %p382_p5 = scmp.ne.s32.totalorder %s187_s24, %s381_s29  ;;  %p386_p10 = scmp.lt.s32.totalorder %s187_s24, %s598_s1 }
  0x3c   : > { %p387_p4 = scmp.lt.s32.totalorder %s385_s3, %s381_s29 }
  0x3d   : > { %p383_p6 = pnand %p382_p5, %p513_p9 }
  0x3e   : > { %p388_p13 = por %p387_p4, %p386_p10 }
  0x3f   : > { %p384_p7 = pneg %p383_p6 }
  0x41   : > { %p389_p8 = pnand %p388_p13, %p384_p7 }
  0x43   : > { %392 = shalt.err (!%p389_p8)
}
  0x44   : > { %278 = dma.vmem_to_hbm [thread:$0]  (%p513_p9), %s190_s17, 16, %s187_s24, %s175_s25  }
  0x45 PF: > { %s201_s12 = sand.u32 1, %s427_s6   ;;  %p604_p11 = scmp.ne.s32.totalorder %s602_s21, 0 }
  0x46   : > { %p605_p12 = scmp.ge.s32.totalorder %s447_s11, 2  ;;  %s202_s13 = scalar_lea.sflag [#allocation4], %s201_s12 }
  0x48   : > { %p285_p0 = pnand %p605_p12, %p604_p11 }
  0x4a   : > { %p286_p1 = pneg %p285_p0 }
  0x4c   : > { %422 = dma.done.wait (%p286_p1), %s202_s13, 16  }
  0x4d   : > { %424 = vsyncadd (%p286_p1), %s202_s13, 4294967280  ;;  %s17_s11 = sadd.s32 1, %s447_s11   ;;  %s606_s6 = smov %s431_s7 }
  0x4e   : > { %p14_p2 = scmp.ge.s32.totalorder %s17_s11, 4   ;;  %s607_s7 = smov %s435_s8 }
  0x4f   : > { %s608_s8 = smov %s518_s20  ;;  %s609_s9 = smov %s443_s10 }
  0x50   : > { %s610_s10 = smov %s612_s14  ;;  %16 = sbr.rel (!%p14_p2) target bundleno = 6 (0x6), region = 69 }
  0x55   :  { %206 = vsyncpa [#allocation3], 1 }
  0x56   :  { %208 = vsyncpa [#allocation3 + $0x1], 1 }
  0x57   :  { %209 = vsyncpa [#allocation4], 1 }
  0x58   :  { %211 = vsyncpa [#allocation4 + $0x1], 1 }

</bundles_post_ra>
